<compile_context>
chip_gen: v5e
topology: v5e:2x2
jax: 0.10.0
libtpu: 0.0.40
codegen_flags: <defaults>
</compile_context>

<pallas_src>
import functools
import math

import jax
import jax.numpy as jnp
from jax.experimental import pallas as pl
from jax.experimental.pallas import tpu as pltpu

_LANE = 128
_NEG_BIG = -1e30


def _policy_kernel(s_ref, w1_ref, b1_ref, w2_ref, b2_ref, out_ref, *, actions, a_pad):
    # fc: Linear(obs_dims -> hidden) + Tanh
    h = jnp.tanh(
        jnp.dot(s_ref[...], w1_ref[...], preferred_element_type=jnp.float32)
        + b1_ref[...]
    )
    # out: Linear(hidden -> actions_padded) + Tanh   (padded cols: tanh(0) = 0)
    logits = jnp.tanh(
        jnp.dot(h, w2_ref[...], preferred_element_type=jnp.float32) + b2_ref[...]
    )
    # Categorical(logits=...) normalization over the REAL action columns only.
    lane = jax.lax.broadcasted_iota(jnp.int32, logits.shape, 1)
    masked = jnp.where(lane < actions, logits, _NEG_BIG)
    m = jnp.max(masked, axis=-1, keepdims=True)
    lse = m + jnp.log(jnp.sum(jnp.exp(masked - m), axis=-1, keepdims=True))
    logp = logits - lse
    # Single lane-dense packed output slab: [logits | log_probs].
    out_ref[:, :a_pad] = logits
    out_ref[:, a_pad:] = logp


def policy_gradient_forward(s, w1, b1, w2, b2, *, batch_tile=512):
    """Returns (logits, log_probs). Weights stored as (in_features, out_features)."""
    batch, obs_dims = s.shape
    hidden = w1.shape[1]
    actions = w2.shape[1]

    # Pad the action dim to a full lane multiple (>= 128) so all stores / reductions
    # after the second matmul run on whole vregs.
    a_pad = max(_LANE, ((actions + _LANE - 1) // _LANE) * _LANE)
    w2_p = jnp.zeros((hidden, a_pad), jnp.float32).at[:, :actions].set(w2)
    b2_p = jnp.zeros((1, a_pad), jnp.float32).at[:, :actions].set(b2)

    # Batch tiling: one resident-weight grid over the batch; pad batch if needed.
    if batch <= batch_tile:
        tb = batch          # block equals full array dim -> no (8,128) issue
        b_pad = batch
        s_in = s
    else:
        tb = batch_tile
        b_pad = math.ceil(batch / tb) * tb
        s_in = jnp.zeros((b_pad, obs_dims), jnp.float32).at[:batch].set(s)

    grid = (b_pad // tb,)
    kernel = functools.partial(_policy_kernel, actions=actions, a_pad=a_pad)

    cost = pl.CostEstimate(
        flops=2 * b_pad * (obs_dims * hidden + hidden * a_pad),
        transcendentals=b_pad * (hidden + 2 * a_pad),
        bytes_accessed=(
            s_in.size + w1.size + b1.size + w2_p.size + b2_p.size
            + b_pad * 2 * a_pad
        ) * 4,
    )

    packed = pl.pallas_call(
        kernel,
        out_shape=jax.ShapeDtypeStruct((b_pad, 2 * a_pad), jnp.float32),
        grid=grid,
        in_specs=[
            pl.BlockSpec((tb, obs_dims), lambda i: (i, 0)),     # streamed s tile
            pl.BlockSpec((obs_dims, hidden), lambda i: (0, 0)),  # resident W1
            pl.BlockSpec((1, hidden), lambda i: (0, 0)),         # resident b1
            pl.BlockSpec((hidden, a_pad), lambda i: (0, 0)),     # resident W2 (padded)
            pl.BlockSpec((1, a_pad), lambda i: (0, 0)),          # resident b2 (padded)
        ],
        out_specs=pl.BlockSpec((tb, 2 * a_pad), lambda i: (i, 0)),
        compiler_params=pltpu.CompilerParams(
            dimension_semantics=("parallel",),
        ),
        cost_estimate=cost,
    )(s_in, w1, b1, w2_p, b2_p)

    logits = packed[:batch, :actions]
    log_probs = packed[:batch, a_pad:a_pad + actions]
    return logits, log_probs


def init_params(key, observation_dims, hidden_dims, actions):
    """Deterministic init mimicking nn.Linear's default uniform(-1/sqrt(fan_in), 1/sqrt(fan_in))."""
    k1, k2, k3, k4 = jax.random.split(key, 4)
    bound1 = 1.0 / jnp.sqrt(observation_dims)
    bound2 = 1.0 / jnp.sqrt(hidden_dims)
    w1 = jax.random.uniform(k1, (observation_dims, hidden_dims), jnp.float32, -bound1, bound1)
    b1 = jax.random.uniform(k2, (1, hidden_dims), jnp.float32, -bound1, bound1)
    w2 = jax.random.uniform(k3, (hidden_dims, actions), jnp.float32, -bound2, bound2)
    b2 = jax.random.uniform(k4, (1, actions), jnp.float32, -bound2, bound2)
    return w1, b1, w2, b2


if __name__ == "__main__":
    observation_dims = 16
    hidden_dims = 128
    actions = 4
    batch = 8

    key = jax.random.PRNGKey(0)
    k_obs, k_params = jax.random.split(key)
    s = jax.random.normal(k_obs, (batch, observation_dims), dtype=jnp.float32)
    w1, b1, w2, b2 = init_params(k_params, observation_dims, hidden_dims, actions)

    logits, log_probs = policy_gradient_forward(s, w1, b1, w2, b2)
    jax.block_until_ready((logits, log_probs))

    # Reference check in plain JAX
    h_ref = jnp.tanh(s @ w1 + b1)
    logits_ref = jnp.tanh(h_ref @ w2 + b2)
    logp_ref = jax.nn.log_softmax(logits_ref, axis=-1)
    assert jnp.allclose(logits, logits_ref, atol=1e-5), "logits mismatch"
    assert jnp.allclose(log_probs, logp_ref, atol=1e-5), "log_probs mismatch"

    print("KERNEL_OK")
</pallas_src>

<mosaic_0001>
module attributes {stable_mosaic.version = 11 : i64} {
  func.func @_policy_kernel(%arg0: i32, %arg1: memref<8x16xf32, #tpu.memory_space<vmem>>, %arg2: memref<16x128xf32, #tpu.memory_space<vmem>>, %arg3: memref<1x128xf32, #tpu.memory_space<vmem>>, %arg4: memref<128x128xf32, #tpu.memory_space<vmem>>, %arg5: memref<1x128xf32, #tpu.memory_space<vmem>>, %arg6: memref<8x256xf32, #tpu.memory_space<vmem>>) attributes {dimension_semantics = [#tpu.dimension_semantics<parallel>], iteration_bounds = array<i64: 1>, scalar_prefetch = 0 : i64, scratch_operands = 0 : i64, tpu.core_type = #tpu.core_type<tc>, window_params = [{transform_indices = @transform_0, window_bounds = array<i64: 8, 16>}, {pipeline_mode = #tpu.pipeline_mode<synchronous>, transform_indices = @transform_1, window_bounds = array<i64: 16, 128>}, {pipeline_mode = #tpu.pipeline_mode<synchronous>, transform_indices = @transform_2, window_bounds = array<i64: 1, 128>}, {pipeline_mode = #tpu.pipeline_mode<synchronous>, transform_indices = @transform_3, window_bounds = array<i64: 128, 128>}, {pipeline_mode = #tpu.pipeline_mode<synchronous>, transform_indices = @transform_4, window_bounds = array<i64: 1, 128>}, {transform_indices = @transform_5, window_bounds = array<i64: 8, 256>}]} {
    %c0 = arith.constant 0 : index
    %c0_0 = arith.constant 0 : index
    %0 = vector.load %arg1[%c0, %c0_0] : memref<8x16xf32, #tpu.memory_space<vmem>>, vector<8x16xf32>
    %c0_1 = arith.constant 0 : index
    %c0_2 = arith.constant 0 : index
    %1 = vector.load %arg2[%c0_1, %c0_2] : memref<16x128xf32, #tpu.memory_space<vmem>>, vector<16x128xf32>
    %cst = arith.constant dense<0.000000e+00> : vector<8x128xf32>
    %2 = tpu.matmul %0, %1, %cst {dimension_numbers = #tpu.dot_dimension_numbers<[1], [0], [0], [1], [0, 0, 1, 1], [], []>} : vector<8x16xf32>, vector<16x128xf32>, vector<8x128xf32> -> vector<8x128xf32>
    %c0_3 = arith.constant 0 : index
    %c0_4 = arith.constant 0 : index
    %3 = vector.load %arg3[%c0_3, %c0_4] : memref<1x128xf32, #tpu.memory_space<vmem>>, vector<1x128xf32>
    %4 = vector.broadcast %3 : vector<1x128xf32> to vector<8x128xf32>
    %5 = arith.addf %2, %4 : vector<8x128xf32>
    %6 = math.tanh %5 : vector<8x128xf32>
    %c0_5 = arith.constant 0 : index
    %c0_6 = arith.constant 0 : index
    %7 = vector.load %arg4[%c0_5, %c0_6] : memref<128x128xf32, #tpu.memory_space<vmem>>, vector<128x128xf32>
    %cst_7 = arith.constant dense<0.000000e+00> : vector<8x128xf32>
    %8 = tpu.matmul %6, %7, %cst_7 {dimension_numbers = #tpu.dot_dimension_numbers<[1], [0], [0], [1], [0, 0, 1, 1], [], []>} : vector<8x128xf32>, vector<128x128xf32>, vector<8x128xf32> -> vector<8x128xf32>
    %c0_8 = arith.constant 0 : index
    %c0_9 = arith.constant 0 : index
    %9 = vector.load %arg5[%c0_8, %c0_9] : memref<1x128xf32, #tpu.memory_space<vmem>>, vector<1x128xf32>
    %10 = vector.broadcast %9 : vector<1x128xf32> to vector<8x128xf32>
    %11 = arith.addf %8, %10 : vector<8x128xf32>
    %12 = math.tanh %11 : vector<8x128xf32>
    %13 = tpu.iota {dimensions = array<i32: 1>} : vector<8x128xi32>
    %c4_i32 = arith.constant 4 : i32
    %14 = vector.broadcast %c4_i32 : i32 to vector<8x128xi32>
    %15 = arith.cmpi slt, %13, %14 : vector<8x128xi32>
    %cst_10 = arith.constant -1.000000e+30 : f32
    %16 = vector.broadcast %cst_10 : f32 to vector<8x128xf32>
    %17 = arith.select %15, %12, %16 : vector<8x128xi1>, vector<8x128xf32>
    %cst_11 = arith.constant dense<0xFF800000> : vector<8xf32>
    %18 = vector.multi_reduction <maximumf>, %17, %cst_11 [1] : vector<8x128xf32> to vector<8xf32>
    %19 = vector.shape_cast %18 : vector<8xf32> to vector<8x1xf32>
    %20 = vector.broadcast %19 : vector<8x1xf32> to vector<8x128xf32>
    %21 = arith.subf %17, %20 : vector<8x128xf32>
    %22 = math.exp %21 : vector<8x128xf32>
    %cst_12 = arith.constant dense<0.000000e+00> : vector<8xf32>
    %23 = vector.multi_reduction <add>, %22, %cst_12 [1] : vector<8x128xf32> to vector<8xf32>
    %24 = vector.shape_cast %23 : vector<8xf32> to vector<8x1xf32>
    %25 = math.log %24 : vector<8x1xf32>
    %26 = arith.addf %19, %25 : vector<8x1xf32>
    %27 = vector.broadcast %26 : vector<8x1xf32> to vector<8x128xf32>
    %28 = arith.subf %12, %27 : vector<8x128xf32>
    %c0_13 = arith.constant 0 : index
    %c0_14 = arith.constant 0 : index
    %29 = vector.load %arg6[%c0_13, %c0_14] : memref<8x256xf32, #tpu.memory_space<vmem>>, vector<8x128xf32>
    tpu.vector_store %arg6[%c0_13, %c0_14], %12 {strides = array<i32>} : memref<8x256xf32, #tpu.memory_space<vmem>>, vector<8x128xf32>,
    %c0_15 = arith.constant 0 : index
    %c128 = arith.constant 128 : index
    %30 = vector.load %arg6[%c0_15, %c128] : memref<8x256xf32, #tpu.memory_space<vmem>>, vector<8x128xf32>
    tpu.vector_store %arg6[%c0_15, %c128], %28 {strides = array<i32>} : memref<8x256xf32, #tpu.memory_space<vmem>>, vector<8x128xf32>,
    return
  }
  func.func @transform_0(%arg0: i32) -> (i32, i32) {
    %c0_i32 = arith.constant 0 : i32
    %c0_i32_0 = arith.constant 0 : i32
    return %arg0, %c0_i32 : i32, i32
  }
  func.func @transform_1(%arg0: i32) -> (i32, i32) {
    %c0_i32 = arith.constant 0 : i32
    %c0_i32_0 = arith.constant 0 : i32
    %c0_i32_1 = arith.constant 0 : i32
    return %c0_i32, %c0_i32_0 : i32, i32
  }
  func.func @transform_2(%arg0: i32) -> (i32, i32) {
    %c0_i32 = arith.constant 0 : i32
    %c0_i32_0 = arith.constant 0 : i32
    %c0_i32_1 = arith.constant 0 : i32
    return %c0_i32, %c0_i32_0 : i32, i32
  }
  func.func @transform_3(%arg0: i32) -> (i32, i32) {
    %c0_i32 = arith.constant 0 : i32
    %c0_i32_0 = arith.constant 0 : i32
    %c0_i32_1 = arith.constant 0 : i32
    return %c0_i32, %c0_i32_0 : i32, i32
  }
  func.func @transform_4(%arg0: i32) -> (i32, i32) {
    %c0_i32 = arith.constant 0 : i32
    %c0_i32_0 = arith.constant 0 : i32
    %c0_i32_1 = arith.constant 0 : i32
    return %c0_i32, %c0_i32_0 : i32, i32
  }
  func.func @transform_5(%arg0: i32) -> (i32, i32) {
    %c0_i32 = arith.constant 0 : i32
    %c0_i32_0 = arith.constant 0 : i32
    return %arg0, %c0_i32 : i32, i32
  }
}

</mosaic_0001>

<bundles_post_ra>
// kernel: tpu_custom_call.1
= control target key start
LH: loop header
LB: loop body
LE: loop exit
PB: predicated region body
PF: predicated region fallthrough
CT: control target
= control target key end

     0   :  { %10 = vsyncpa [#allocation3], 0  ;;  %s347_s0 = inlined_call_operand.hbm [shape: f32[8,16], index: 0, kind: input, shape index: {}]   ;;  %s348_s1 = inlined_call_operand.hbm [shape: f32[16,128], index: 1, kind: input, shape index: {}]   ;;  %s349_s2 = inlined_call_operand.vmem [shape: f32[1,128], index: 2, kind: input, shape index: {}]   ;;  %s350_s3 = inlined_call_operand.hbm [shape: f32[128,128], index: 3, kind: input, shape index: {}]   ;;  %s351_s4 = inlined_call_operand.vmem [shape: f32[1,128], index: 4, kind: input, shape index: {}]   ;;  %s352_s5 = inlined_call_operand.hbm [shape: f32[8,256], index: 5, kind: output, shape index: {}]  }
   0x1   :  { %11 = vsyncpa [#allocation6], 0  ;;  %s28_s20 = sshll.u32 %s348_s1, 4  ;;  %s29_s20 = int_to_ptr.hbm [resolvable:$true] %s28_s20 }
   0x2   :  { %12 = vsyncpa [#allocation4], 0  ;;  %s293_s21 = smov [#allocation5]   ;;  %s18_s25 = sshll.u32 %s347_s0, 4  ;;  %s19_s25 = int_to_ptr.hbm [resolvable:$true] %s18_s25 }
   0x3   :  { %s30_s22 = sshll.u32 %s293_s21, 4  ;;  %s294_s26 = smov 128   ;;  %s31_s22 = int_to_ptr.vmem [resolvable:$true] %s30_s22 }
   0x4   :  { %s295_s27 = smov 8   ;;  %s296_s28 = smov [#allocation2]  }
   0x5   :  { %36 = dma.hbm_to_vmem [thread:$0]  %s29_s20, 256, %s31_s22, [#allocation6], %s294_s26, %s294_s26, %s295_s27  }
   0x6   :  { %s20_s29 = sshll.u32 %s296_s28, 4  ;;  %s43_s7 = sshll.u32 %s350_s3, 4  ;;  %s21_s29 = int_to_ptr.vmem [resolvable:$true] %s20_s29  ;;  %s44_s7 = int_to_ptr.hbm [resolvable:$true] %s43_s7 }
   0x7   :  { %23 = dma.hbm_to_vmem [thread:$0]  %s19_s25, 128, %s21_s29, [#allocation3]  }
   0x8   :  { %s297_s1 = smov [#allocation7]  }
   0x9   :  { %s45_s8 = sshll.u32 %s297_s1, 4  ;;  %s46_s8 = int_to_ptr.vmem [resolvable:$true] %s45_s8 }
   0xa   :  { %51 = dma.hbm_to_vmem [thread:$0]  %s44_s7, 2048, %s46_s8, [#allocation6], %s294_s26, %s294_s26, %s295_s27  }
   0xb   :  { %287 = dma.done.wait [#allocation3], 128  }
   0xc   :  { %288 = vsyncadd [#allocation3], 4294967168 }
   0xd   :  { %289 = dma.done.wait [#allocation6], 2304  }
   0xe   :  { %290 = vsyncadd [#allocation6], 4294964992  ;;  %v68_v0 = vld [vmem:[#allocation5 + $0x8] sm:$0xff]  ;;  %v67_v1 = vld [vmem:[#allocation5] sm:$0xff]  ;;  %vm73_vm0 = vcmask 130048   ;;  %v139_v24 = vlaneseq  ;;  %s163_s13 = sshll.u32 %s352_s5, 4  ;;  %s164_s13 = int_to_ptr.hbm [resolvable:$true] %s163_s13 }
   0xf   :  { %91 = vmatpush.msra.mxu0 %v68_v0  ;;  %v66_v2 = vld [vmem:[#allocation2] sm:$0xff]  ;;  %v113_v3 = vld [vmem:[#allocation7 + $0x78] sm:$0xff]  ;;  %v112_v4 = vld [vmem:[#allocation7 + $0x70] sm:$0xff] }
  0x10   :  { %118 = vmatpush.msra.mxu1 %v113_v3  ;;  %v111_v5 = vld [vmem:[#allocation7 + $0x68] sm:$0xff]  ;;  %v110_v6 = vld [vmem:[#allocation7 + $0x60] sm:$0xff]  ;;  %v109_v7 = vld [vmem:[#allocation7 + $0x58] sm:$0xff]  ;;  %v140_v27 = vand.u32 127, %v139_v24 }
  0x11   :  { %92 = vmatpush.msra.mxu0 %v67_v1  ;;  %v108_v8 = vld [vmem:[#allocation7 + $0x50] sm:$0xff]  ;;  %v107_v9 = vld [vmem:[#allocation7 + $0x48] sm:$0xff]  ;;  %v106_v10 = vld [vmem:[#allocation7 + $0x40] sm:$0xff] }
  0x12   :  { %174 = vmatmul.msk.f32.vlgmr.msra.gmra.mxu0 %vm73_vm0, %v66_v2  ;;  %119 = vmatpush.msra.mxu1 %v112_v4  ;;  %v105_v11 = vld [vmem:[#allocation7 + $0x38] sm:$0xff]  ;;  %v104_v12 = vld [vmem:[#allocation7 + $0x30] sm:$0xff]  ;;  %v103_v13 = vld [vmem:[#allocation7 + $0x28] sm:$0xff]  ;;  %vm141_vm1 = vcmp.lt.s32.totalorder %v140_v27, 4 }
  0x13   :  { %v102_v14 = vld [vmem:[#allocation7 + $0x20] sm:$0xff]  ;;  %v101_v15 = vld [vmem:[#allocation7 + $0x18] sm:$0xff]  ;;  %v100_v16 = vld [vmem:[#allocation7 + $0x10] sm:$0xff] }
  0x14   :  { %120 = vmatpush.msra.mxu1 %v111_v5  ;;  %v99_v17 = vld [vmem:[#allocation7 + $0x8] sm:$0xff]  ;;  %v98_v18 = vld [vmem:[#allocation7] sm:$0xff] }
  0x15   :  { %v181_v19 = vld [vmem:[%s349_s2] ss:$0 sm:$0xff]  ;;  %s298_s2 = smov [#allocation8]  }
  0x16   :  { %121 = vmatpush.msra.mxu1 %v110_v6  ;;  %v182_v23 = vld [vmem:[%s351_s4] ss:$0 sm:$0xff]  ;;  %s161_s4 = sshll.u32 %s298_s2, 4  ;;  %s162_s4 = int_to_ptr.vmem [resolvable:$true] %s161_s4 }
  0x18   :  { %122 = vmatpush.msra.mxu1 %v109_v7 }
  0x1a   :  { %123 = vmatpush.msra.mxu1 %v108_v8 }
  0x1c   :  { %124 = vmatpush.msra.mxu1 %v107_v9 }
  0x1e   :  { %125 = vmatpush.msra.mxu1 %v106_v10 }
  0x20   :  { %126 = vmatpush.msra.mxu1 %v105_v11 }
  0x22   :  { %127 = vmatpush.msra.mxu1 %v104_v12 }
  0x24   :  { %128 = vmatpush.msra.mxu1 %v103_v13 }
  0x26   :  { %129 = vmatpush.msra.mxu1 %v102_v14 }
  0x28   :  { %130 = vmatpush.msra.mxu1 %v101_v15 }
  0x2a   :  { %131 = vmatpush.msra.mxu1 %v100_v16 }
  0x2c   :  { %132 = vmatpush.msra.mxu1 %v99_v17 }
  0x2e   :  { %133 = vmatpush.msra.mxu1 %v98_v18 }
  0x8f   :  { %v94_v20 = vpop.f32.mrf.mxu0 }
  0x90   :  { %v95_v21 = vadd.f32 %v181_v19, %v94_v20 }
  0x92   :  { %183 = vtanh.f32 %v95_v21 }
  0x98   :  { %v184_v22 = vpop.eup %183 }
  0x99   :  { %134 = vmatmul.f32.vlgmr.msra.gmra.mxu1 %v184_v22 }
 0x116   :  { %v135_v25 = vpop.f32.mrf.mxu1 }
 0x117   :  { %v136_v26 = vadd.f32 %v182_v23, %v135_v25 }
 0x119   :  { %185 = vtanh.f32 %v136_v26 }
 0x11f   :  { %v186_v28 = vpop.eup %185 }
 0x120   :  { %154 = vst [vmem:[#allocation8] sm:$0xff] %v186_v28  ;;  %v142_v29 = vsel %vm141_vm1, %v186_v28, -1e+30 }
 0x121   :  { %143 = vmax.xlane.f32.xlu0 %v142_v29 }
 0x194   :  { %v144_v30 = vpop.xlane.xlu0 %143 }
 0x195   :  { %v145_v31 = vsub.f32 %v142_v29, %v144_v30 }
 0x197   :  { %v146_v32 = vmul.f32 1.442695, %v145_v31 }
 0x199   :  { %187 = vpow2.f32 %v146_v32 }
 0x19f   :  { %v188_v33 = vpop.eup %187 }
 0x1a0   :  { %148 = vadd.xlane.f32.xlu0 %v188_v33 }
 0x213   :  { %v149_v34 = vpop.xlane.xlu0 %148 }
 0x214   :  { %189 = vlog2.f32 %v149_v34 }
 0x21a   :  { %v190_v35 = vpop.eup %189 }
 0x21b   :  { %v151_v36 = vmul.f32 0.6931472, %v190_v35 }
 0x21d   :  { %v152_v37 = vadd.f32 %v151_v36, %v144_v30 }
 0x21f   :  { %v153_v38 = vsub.f32 %v186_v28, %v152_v37 }
 0x221   :  { %155 = vst [vmem:[#allocation8 + $0x8] sm:$0xff] %v153_v38 }
 0x222   :  { %166 = dma.vmem_to_hbm [thread:$0]  %s162_s4, 256, %s164_s13, [#allocation4]  }
 0x223   :  { %291 = dma.done.wait [#allocation4], 256  }
 0x224   :  { %292 = vsyncadd [#allocation4], 4294967040 }
 0x225   :  { %171 = vsyncpa [#allocation3], 1 }
 0x226   :  { %172 = vsyncpa [#allocation6], 1 }
 0x227   :  { %173 = vsyncpa [#allocation4], 1 }

</bundles_post_ra>
